<compile_context>
chip_gen: v7x
topology: tpu7x:2x2x1
jax: 0.10.0
libtpu: 0.0.40
codegen_flags: <defaults>
</compile_context>

<pallas_src>
import functools

import jax
import jax.numpy as jnp
from jax.experimental import pallas as pl
from jax.experimental.pallas import tpu as pltpu


def _ce_partial_sum_kernel(x_ref, y_ref, out_ref, *, n_total, tile_n):
    """One grid step: (tile_n, C) logits + (tile_n, 1) targets -> scalar partial
    sum of per-example cross-entropy, broadcast into a lane-dense (1, 8, 128)
    output block (only element [0, 0, 0] is consumed by the wrapper)."""
    i = pl.program_id(0)

    # Upcast once so bf16 inputs are supported (v5e VPU/EUP has no bf16 path).
    x = x_ref[...].astype(jnp.float32)                           # (tile_n, C)
    y = y_ref[...]                                               # (tile_n, 1)

    # Numerically stable log-softmax denominator; exp computed exactly once.
    m = jnp.max(x, axis=-1, keepdims=True)                       # (tile_n, 1)
    e = jnp.exp(x - m)                                           # (tile_n, C)
    lse = m + jnp.log(jnp.sum(e, axis=-1, keepdims=True))        # (tile_n, 1)

    # Gather the target-class logit via iota + compare + one select pass.
    # TODO(synk): if a v7x bundle dump shows VALU/XLU saturation, offload the
    #             C-axis reductions to the idle MXU (dot with a ones matrix).
    col = jax.lax.broadcasted_iota(jnp.int32, x.shape, 1)        # (tile_n, C)
    picked = jnp.sum(jnp.where(col == y, x, 0.0),
                     axis=-1, keepdims=True)                     # (tile_n, 1)

    # Mask rows past the true batch size (garbage rows of the last partial
    # tile).  A select -- not arithmetic masking -- so inf/NaN produced from
    # garbage logits can never leak into the partial sum.
    row = i * tile_n + jax.lax.broadcasted_iota(jnp.int32, (tile_n, 1), 0)
    per_row = jnp.where(row < n_total, lse - picked, 0.0)        # (tile_n, 1)

    # Per-tile partial sum -> full-vreg, unmasked, lane-dense store.
    partial = jnp.sum(per_row)
    out_ref[...] = jnp.broadcast_to(partial, out_ref.shape).astype(out_ref.dtype)


def myloss(x, y, *, target_tile_bytes=8 << 20):
    """x: (N, C) float32/bfloat16 logits; y: (N,) integer class indices.
    Returns scalar f32 mean cross-entropy (default nn.CrossEntropyLoss).
    Out-of-range targets are not checked (they contribute loss = logsumexp
    instead of raising like PyTorch does)."""
    n, c = x.shape
    y2d = y.astype(jnp.int32).reshape(n, 1)
    x_bytes = jnp.dtype(x.dtype).itemsize

    # Generation-aware VMEM budget for the double-buffered input tiles:
    # ~half of physical VMEM, capped (v5e/v6e: 128 MiB -> 48 MiB; v7x: 64 -> 32).
    try:
        vmem_cap = int(pltpu.get_tpu_info().vmem_capacity_bytes)
    except Exception:  # info unavailable -> conservative (v7x-safe) default
        vmem_cap = 64 << 20
    vmem_budget = min(vmem_cap // 2, 48 << 20)

    # Rows per tile: target a multi-MiB logit slab, bounded by the VMEM budget
    # (double-buffered x + y tiles, ~2 MiB headroom).  Multiple of 8 sublanes.
    per_row_dbuf = 2 * (c * x_bytes + 4)
    rows_target = max(8, (target_tile_bytes // (c * x_bytes)) // 8 * 8)
    rows_vmem = max(8, ((vmem_budget - (2 << 20)) // per_row_dbuf) // 8 * 8)
    rows = min(rows_target, rows_vmem)

    if n <= 16:
        tile_n = n                                   # tiny batch: one full tile
    else:
        # Guarantee >= 2 grid steps so double-buffering overlaps DMA with
        # compute and the "parallel" axis can shard across v7x's two cores.
        half = ((n + 1) // 2 + 7) // 8 * 8
        tile_n = min(rows, half)
    grid = pl.cdiv(n, tile_n)

    # VMEM limit: actual double-buffered footprint + headroom, within physical.
    tile_bytes = 2 * tile_n * (c * x_bytes + 4) + 2 * (8 * 128 * 4)
    vmem_limit = int(min(max(tile_bytes + (4 << 20), 16 << 20),
                         (vmem_cap * 3) // 4))

    kernel = functools.partial(_ce_partial_sum_kernel, n_total=n, tile_n=tile_n)

    partials = pl.pallas_call(
        kernel,
        out_shape=jax.ShapeDtypeStruct((grid, 8, 128), jnp.float32),
        grid=(grid,),
        in_specs=[
            pl.BlockSpec((tile_n, c), lambda i: (i, 0)),   # lane-dense logits
            pl.BlockSpec((tile_n, 1), lambda i: (i, 0)),   # targets
        ],
        out_specs=pl.BlockSpec((1, 8, 128), lambda i: (i, 0, 0)),
        compiler_params=pltpu.CompilerParams(
            dimension_semantics=("parallel",),             # megacore on v7x
            vmem_limit_bytes=vmem_limit,
        ),
    )(x, y2d)

    # Finish the mean over the TRUE N (tail rows were masked in-kernel).
    return jnp.sum(partials[:, 0, 0]) * jnp.float32(1.0 / n)


if __name__ == "__main__":
    key = jax.random.PRNGKey(0)
    k1, k2, k3, k4 = jax.random.split(key, 4)

    def ref_ce(x, y):
        nn_ = x.shape[0]
        return jnp.mean(jax.nn.logsumexp(x, axis=-1) - x[jnp.arange(nn_), y])

    # Case 1: tiny single-tile path (grid = 1).
    N1, C1 = 8, 32
    x1 = jax.random.normal(k1, (N1, C1), dtype=jnp.float32)
    y1 = jax.random.randint(k2, (N1,), 0, C1, dtype=jnp.int32)
    loss1 = myloss(x1, y1)
    jax.block_until_ready(loss1)
    r1 = ref_ce(x1, y1)
    assert jnp.allclose(loss1, r1, atol=1e-5, rtol=1e-5), (loss1, r1)

    # Case 2: default tiling -> half-split, grid = 2, masked partial last tile.
    N2, C2 = 300, 128
    x2 = jax.random.normal(k3, (N2, C2), dtype=jnp.float32)
    y2 = jax.random.randint(k4, (N2,), 0, C2, dtype=jnp.int32)
    loss2 = myloss(x2, y2)
    jax.block_until_ready(loss2)
    r2 = ref_ce(x2, y2)
    assert jnp.allclose(loss2, r2, atol=1e-5, rtol=1e-5), (loss2, r2)

    # Case 3: small tile budget -> grid = 5 with a 44-valid-row last tile.
    loss3 = myloss(x2, y2, target_tile_bytes=32 * 1024)
    jax.block_until_ready(loss3)
    assert jnp.allclose(loss3, r2, atol=1e-5, rtol=1e-5), (loss3, r2)

    print("KERNEL_OK")
</pallas_src>

<mosaic_0001>
module attributes {stable_mosaic.version = 11 : i64} {
  func.func @_ce_partial_sum_kernel(%arg0: i32, %arg1: memref<8x32xf32, #tpu.memory_space<vmem>>, %arg2: memref<8x1xi32, #tpu.memory_space<vmem>>, %arg3: memref<1x8x128xf32, #tpu.memory_space<vmem>>) attributes {dimension_semantics = [#tpu.dimension_semantics<parallel>], iteration_bounds = array<i64: 1>, scalar_prefetch = 0 : i64, scratch_operands = 0 : i64, tpu.core_type = #tpu.core_type<tc>, window_params = [{transform_indices = @transform_0, window_bounds = array<i64: 8, 32>}, {transform_indices = @transform_1, window_bounds = array<i64: 8, 1>}, {transform_indices = @transform_2, window_bounds = array<i64: 1, 8, 128>}]} {
    %c0 = arith.constant 0 : index
    %c0_0 = arith.constant 0 : index
    %0 = vector.load %arg1[%c0, %c0_0] : memref<8x32xf32, #tpu.memory_space<vmem>>, vector<8x32xf32>
    %c0_1 = arith.constant 0 : index
    %c0_2 = arith.constant 0 : index
    %1 = vector.load %arg2[%c0_1, %c0_2] : memref<8x1xi32, #tpu.memory_space<vmem>>, vector<8x1xi32>
    %cst = arith.constant dense<0xFF800000> : vector<8xf32>
    %2 = vector.multi_reduction <maximumf>, %0, %cst [1] : vector<8x32xf32> to vector<8xf32>
    %3 = vector.shape_cast %2 : vector<8xf32> to vector<8x1xf32>
    %4 = vector.broadcast %3 : vector<8x1xf32> to vector<8x32xf32>
    %5 = arith.subf %0, %4 : vector<8x32xf32>
    %6 = math.exp %5 : vector<8x32xf32>
    %cst_3 = arith.constant dense<0.000000e+00> : vector<8xf32>
    %7 = vector.multi_reduction <add>, %6, %cst_3 [1] : vector<8x32xf32> to vector<8xf32>
    %8 = vector.shape_cast %7 : vector<8xf32> to vector<8x1xf32>
    %9 = math.log %8 : vector<8x1xf32>
    %10 = arith.addf %3, %9 : vector<8x1xf32>
    %11 = tpu.iota {dimensions = array<i32: 1>} : vector<8x32xi32>
    %12 = vector.broadcast %1 : vector<8x1xi32> to vector<8x32xi32>
    %13 = arith.cmpi eq, %11, %12 : vector<8x32xi32>
    %cst_4 = arith.constant 0.000000e+00 : f32
    %14 = vector.broadcast %cst_4 : f32 to vector<8x32xf32>
    %15 = arith.select %13, %0, %14 : vector<8x32xi1>, vector<8x32xf32>
    %cst_5 = arith.constant dense<0.000000e+00> : vector<8xf32>
    %16 = vector.multi_reduction <add>, %15, %cst_5 [1] : vector<8x32xf32> to vector<8xf32>
    %17 = vector.shape_cast %16 : vector<8xf32> to vector<8x1xf32>
    %c8_i32 = arith.constant 8 : i32
    %18 = arith.muli %arg0, %c8_i32 : i32
    %19 = tpu.iota {dimensions = array<i32: 0>} : vector<8x1xi32>
    %20 = vector.broadcast %18 : i32 to vector<8x1xi32>
    %21 = arith.addi %20, %19 : vector<8x1xi32>
    %c8_i32_6 = arith.constant 8 : i32
    %22 = vector.broadcast %c8_i32_6 : i32 to vector<8x1xi32>
    %23 = arith.cmpi slt, %21, %22 : vector<8x1xi32>
    %24 = arith.subf %10, %17 : vector<8x1xf32>
    %cst_7 = arith.constant 0.000000e+00 : f32
    %25 = vector.broadcast %cst_7 : f32 to vector<8x1xf32>
    %26 = arith.select %23, %24, %25 : vector<8x1xi1>, vector<8x1xf32>
    %27 = vector.shape_cast %26 : vector<8x1xf32> to vector<1x8x1xf32>
    %cst_8 = arith.constant dense<0.000000e+00> : vector<1xf32>
    %28 = vector.multi_reduction <add>, %27, %cst_8 [1, 2] : vector<1x8x1xf32> to vector<1xf32>
    %29 = vector.shape_cast %28 : vector<1xf32> to vector<1x1x1xf32>
    %30 = vector.extract %29[0, 0, 0] : f32 from vector<1x1x1xf32>
    %31 = vector.broadcast %30 : f32 to vector<1x8x128xf32>
    %c0_9 = arith.constant 0 : index
    %c0_10 = arith.constant 0 : index
    %c0_11 = arith.constant 0 : index
    %32 = vector.load %arg3[%c0_9, %c0_10, %c0_11] : memref<1x8x128xf32, #tpu.memory_space<vmem>>, vector<1x8x128xf32>
    tpu.vector_store %arg3[%c0_9, %c0_10, %c0_11], %31 {strides = array<i32>} : memref<1x8x128xf32, #tpu.memory_space<vmem>>, vector<1x8x128xf32>,
    return
  }
  func.func @transform_0(%arg0: i32) -> (i32, i32) {
    %c0_i32 = arith.constant 0 : i32
    %c0_i32_0 = arith.constant 0 : i32
    return %arg0, %c0_i32 : i32, i32
  }
  func.func @transform_1(%arg0: i32) -> (i32, i32) {
    %c0_i32 = arith.constant 0 : i32
    %c0_i32_0 = arith.constant 0 : i32
    return %arg0, %c0_i32 : i32, i32
  }
  func.func @transform_2(%arg0: i32) -> (i32, i32, i32) {
    %c0_i32 = arith.constant 0 : i32
    %c0_i32_0 = arith.constant 0 : i32
    %c0_i32_1 = arith.constant 0 : i32
    return %arg0, %c0_i32, %c0_i32_0 : i32, i32, i32
  }
}

</mosaic_0001>

<bundles_post_ra>
// kernel: tpu_custom_call.1
= control target key start
LH: loop header
LB: loop body
LE: loop exit
PB: predicated region body
PF: predicated region fallthrough
CT: control target
= control target key end

     0   :  { %vm14_vm0 = vcmask 261120   ;;  %s143_s0 = inlined_call_operand.vmem [shape: f32[8,32], index: 0, kind: input, shape index: {}]   ;;  %s144_s1 = inlined_call_operand.vmem [shape: s32[8,1], index: 1, kind: input, shape index: {}]   ;;  %s145_s2 = inlined_call_operand.hbm [shape: f32[1,8,128], index: 2, kind: output, shape index: {}]  }
   0x1   :  { %v12_v0 = vld [vmem:[%s143_s0] sm:$0xff] }
   0x2   :  { %7 = vsyncpa [#allocation3], 0  ;;  %v15_v1 = vsel %vm14_vm0, %v12_v0, -inf  ;;  %v105_v2 = vmov 0   ;;  %v13_v3 = vld [vmem:[%s144_s1] sm:$0xff]  ;;  %v27_v7 = vlaneseq  ;;  %vm45_vm2 = vcmask 7168  }
   0x3   :  { %76 = vset.pattern.permute.xlu0 %v105_v2  ;;  %s106_s0 = smov [#allocation2]  }
   0x4   :  { %16 = vmax.xlane.f32.xlu0 %v15_v1  ;;  %v28_v8 = vand.u32 127, %v27_v7  ;;  %s64_s1 = sshll.u32 %s106_s0, 4  ;;  %s65_s1 = int_to_ptr.vmem [resolvable:$true] %s64_s1 }
   0x5   :  { %s81_s14 = scalar_lea.vmem %s65_s1, 128  ;;  %p86_p1 = scmp.lt.s32.totalorder %s65_s1, %s65_s1 }
   0x6   :  { %p82_p0 = scmp.ne.s32.totalorder %s65_s1, %s81_s14  ;;  %p87_p2 = scmp.lt.s32.totalorder %s81_s14, %s81_s14 }
   0x8   :  { %p88_p3 = por %p87_p2, %p86_p1 }
   0xa   :  { %p89_p4 = pnand %p88_p3, %p82_p0 }
  0x1a   :  { %30 = vperm.xlu0 %76, %v13_v3  }
  0x91   :  { %v17_v4 = vpop.xlane.xlu0 %16 }
  0x92   :  { %v18_v5 = vsub.f32 %v12_v0, %v17_v4 }
  0x94   :  { %v19_v6 = vmul.f32 1.442695, %v18_v5 }
  0x96   :  { %77 = vpow2.f32 %v19_v6 }
  0x99   :  { %v31_v9 = vpop.permute.xlu0 %30 }
  0x9a   :  { %vm32_vm1 = vcmp.eq.s32.totalorder %v28_v8, %v31_v9 }
  0x9b   :  { %v33_v11 = vsel %vm32_vm1, %v12_v0, 0.0 }
  0x9c   :  { %v34_v13 = vsel %vm14_vm0, %v33_v11, 0.0 }
  0xa0   :  { %v78_v10 = vpop.eup %77 }
  0xa1   :  { %v21_v12 = vsel %vm14_vm0, %v78_v10, 0.0 }
  0xa2   :  { %22 = vadd.xlane.f32.xlu1 %v21_v12 }
  0xa6   :  { %35 = vadd.xlane.f32.xlu1 %v34_v13 }
 0x12f   :  { %v23_v14 = vpop.xlane.xlu1 %22 }
 0x130   :  { %79 = vlog2.f32 %v23_v14 }
 0x133   :  { %v36_v17 = vpop.xlane.xlu1 %35 }
 0x13a   :  { %v80_v15 = vpop.eup %79 }
 0x13b   :  { %v25_v16 = vmul.f32 0.6931472, %v80_v15 }
 0x13d   :  { %v26_v18 = vadd.f32 %v25_v16, %v17_v4 }
 0x13f   :  { %v43_v19 = vsub.f32 %v26_v18, %v36_v17 }
 0x141   :  { %v46_v20 = vsel %vm45_vm2, %v43_v19, 0.0 }
 0x142   :  { %47 = vadd.xlane.f32.xlu1 %v46_v20 }
 0x1cf   :  { %v48_v21 = vpop.xlane.xlu1 %47 }
 0x1d0   :  { %v49_v22 = vrot.slane %v48_v21, 4 }
 0x1d2   :  { %v50_v23 = vadd.f32 %v49_v22, %v48_v21 }
 0x1d4   :  { %v51_v24 = vrot.slane %v50_v23, 2 }
 0x1d6   :  { %v52_v25 = vadd.f32 %v51_v24, %v50_v23 }
 0x1d8   :  { %v53_v26 = vrot.slane %v52_v25, 1 }
 0x1da   :  { %v54_v27 = vadd.f32 %v53_v26, %v52_v25 }
 0x1dc   :  { %72 = vpush %v54_v27 }
 0x20d   :  { %s73_s13 = spop %72 }
 0x20e   :  { %v56_v28 = vstv %s73_s13 }
 0x20f   :  { %57 = vst [vmem:[#allocation2] sm:$0xff] %v56_v28 }
 0x210   :  { %92 = shalt.err (!%p89_p4)
}
 0x211   :  { %s93_s17 = scalar_lea.hbm %s145_s2, 128 }
 0x212   :  { %p94_p5 = scmp.ne.s32.totalorder %s145_s2, %s93_s17  ;;  %p97_p6 = scmp.lt.u32.totalorder %s93_s17, %s145_s2 }
 0x214   :  { %p99_p7 = pnand %p97_p6, %p94_p5 }
 0x216   :  { %102 = shalt.err (!%p99_p7)
}
 0x217   :  { %67 = dma.vmem_to_hbm [thread:$0]  %s65_s1, 128, %s145_s2, [#allocation3]  }
 0x218   :  { %103 = dma.done.wait [#allocation3], 128  }
 0x219   :  { %104 = vsyncadd [#allocation3], 4294967168 }
 0x21a   :  { %71 = vsyncpa [#allocation3], 1 }

</bundles_post_ra>
